<compile_context>
chip_gen: v6e
topology: v6e:2x2x1
jax: 0.10.0
libtpu: 0.0.40
codegen_flags: <defaults>
</compile_context>

<pallas_src>
import math
import functools

import jax
import jax.numpy as jnp
from jax import lax
from jax.experimental import pallas as pl
from jax.experimental.pallas import tpu as pltpu


def _round_up(n: int, m: int) -> int:
    return ((n + m - 1) // m) * m


def _affinity(x, c, coef, c2):
    """Normalized splat affinities for one [TS, D] token tile.

    x    : [TS, D] f32 tokens (zero rows where S was padded)
    c    : [K, D]  f32 splat centers
    coef : [1, K]  f32 = -0.5 / (temperature * scale_k^2)
    c2   : [1, K]  f32 = ||c_k||^2
    """
    t2 = jnp.sum(x * x, axis=-1, keepdims=True)                       # [TS, 1]
    # x . c^T without materializing a transpose (contract the D axis of both).
    xc = lax.dot_general(x, c, (((1,), (1,)), ((), ())),
                         preferred_element_type=jnp.float32)          # [TS, K]
    dist = jnp.maximum(t2 - 2.0 * xc + c2, 0.0)                       # clamp cancellation
    aff = jnp.exp(coef * dist)                                        # temperature folded into coef
    denom = jnp.sum(aff, axis=-1, keepdims=True) + 1e-8
    return aff / denom


def _splat_state_kernel(x_ref, c_ref, coef_ref, c2_ref, acc_ref, aff_ref):
    """Pass 1: aff tile out + accumulate acc[b] += aff^T @ x over S tiles."""
    s = pl.program_id(1)

    x = x_ref[...]                                                    # [TS, D] f32
    aff = _affinity(x, c_ref[...], coef_ref[...], c2_ref[...])        # [TS, K] f32
    aff_ref[...] = aff.astype(aff_ref.dtype)

    @pl.when(s == 0)
    def _init():
        acc_ref[...] = jnp.zeros_like(acc_ref)

    # acc += aff^T @ x : contract the S axis of both operands directly
    # (no XLU transpose); f32 MXU accumulation.
    acc_ref[...] += lax.dot_general(
        aff, x,
        dimension_numbers=(((0,), (0,)), ((), ())),
        preferred_element_type=jnp.float32)                           # [K, D]


def _splat_output_kernel(aff_ref, z_ref, out_ref):
    """Pass 2: out tile = aff @ z  (z already carries both D x D projections)."""
    out_ref[...] = jnp.dot(aff_ref[...], z_ref[...],
                           preferred_element_type=jnp.float32).astype(out_ref.dtype)


def splat_attention_forward(x, centers, scales, wv, wo,
                            temperature=1.0, block_s=512):
    """x: [B,S,D]; centers: [K,D]; scales: [K]; wv, wo: [D,D] (nn.Linear weights)."""
    B, S, D = x.shape
    K = centers.shape[0]
    f32 = jnp.float32

    # ---- balanced S tiling (sublane multiple of 8, tiles as equal as possible)
    n_tiles = pl.cdiv(S, block_s)
    TS = _round_up(pl.cdiv(S, n_tiles), 8)
    n_s = pl.cdiv(S, TS)
    Sp = n_s * TS

    x32 = x.astype(f32)
    if Sp != S:
        # Zero-padded rows contribute exactly 0 to acc; their outputs are sliced off.
        x_in = jnp.pad(x32, ((0, 0), (0, Sp - S), (0, 0)))
    else:
        x_in = x32

    # Loop-invariant per-splat scalars (temperature folded into coef).
    c32 = centers.astype(f32)
    scales_c = jnp.clip(scales.astype(f32), 0.1, 2.0)        # matches get_scale().clamp
    coef = (-0.5 / (float(temperature) * scales_c * scales_c)).reshape(1, K)
    c2 = jnp.sum(c32 * c32, axis=-1).reshape(1, K)

    vmem_limit = 48 * 1024 * 1024  # headroom under v7x's 64 MiB physical VMEM

    # ---- pass 1: per-batch acc = aff^T @ x, plus aff tiles ------------------
    acc, aff = pl.pallas_call(
        _splat_state_kernel,
        out_shape=(jax.ShapeDtypeStruct((B, K, D), f32),       # acc (per-batch)
                   jax.ShapeDtypeStruct((B, Sp, K), f32)),     # aff (per S tile)
        grid_spec=pltpu.PrefetchScalarGridSpec(
            num_scalar_prefetch=0,
            grid=(B, n_s),
            in_specs=[
                pl.BlockSpec((None, TS, D), lambda b, s: (b, s, 0)),   # x tile
                pl.BlockSpec((K, D), lambda b, s: (0, 0)),             # centers
                pl.BlockSpec((1, K), lambda b, s: (0, 0)),             # coef
                pl.BlockSpec((1, K), lambda b, s: (0, 0)),             # ||c||^2
            ],
            out_specs=(
                pl.BlockSpec((None, K, D), lambda b, s: (b, 0, 0)),    # acc (resident)
                pl.BlockSpec((None, TS, K), lambda b, s: (b, s, 0)),   # aff tile
            ),
        ),
        compiler_params=pltpu.CompilerParams(
            dimension_semantics=("parallel", "arbitrary"),
            vmem_limit_bytes=vmem_limit),
    )(x_in, c32, coef, c2)

    # ---- tiny per-batch projection in XLA: z = (acc @ Wv^T) @ Wo^T ----------
    # nn.Linear computes x @ W.T, i.e. contraction over the input axis of W.
    z = jnp.einsum('bkd,ed->bke', acc, wv.astype(f32), precision='highest')
    z = jnp.einsum('bkd,ed->bke', z, wo.astype(f32), precision='highest')

    # ---- pass 2: out tiles = aff @ z  (fully parallel grid) -----------------
    out = pl.pallas_call(
        _splat_output_kernel,
        out_shape=jax.ShapeDtypeStruct((B, Sp, D), x.dtype),
        grid_spec=pltpu.PrefetchScalarGridSpec(
            num_scalar_prefetch=0,
            grid=(B, n_s),
            in_specs=[
                pl.BlockSpec((None, TS, K), lambda b, s: (b, s, 0)),   # aff tile
                pl.BlockSpec((None, K, D), lambda b, s: (b, 0, 0)),    # z[b] (resident)
            ],
            out_specs=pl.BlockSpec((None, TS, D), lambda b, s: (b, s, 0)),
        ),
        compiler_params=pltpu.CompilerParams(
            dimension_semantics=("parallel", "parallel"),
            vmem_limit_bytes=vmem_limit),
    )(aff, z)

    if Sp != S:
        out = out[:, :S, :]
    return out


def reference_forward(x, centers, scales, wv, wo, temperature=1.0):
    scales_c = jnp.clip(scales, 0.1, 2.0)
    diff = x[:, :, None, :] - centers[None, None, :, :]
    dist_sq = jnp.sum(diff ** 2, axis=-1)
    aff = jnp.exp(-0.5 * dist_sq / (scales_c ** 2)[None, None, :])
    aff = aff ** (1.0 / temperature)
    aff = aff / (jnp.sum(aff, axis=-1, keepdims=True) + 1e-8)
    tv = jnp.einsum('bsd,ed->bse', x, wv, precision='highest')     # x @ Wv.T
    ss = jnp.einsum('bsk,bsd->bkd', aff, tv, precision='highest')
    to = jnp.einsum('bsk,bkd->bsd', aff, ss, precision='highest')
    return jnp.einsum('bsd,ed->bse', to, wo, precision='highest')  # @ Wo.T


if __name__ == "__main__":
    # Small shapes consistent with the module; S deliberately not a multiple
    # of 8 so the S-padding path is exercised.
    B, S, D, K = 2, 150, 48, 16          # batch, seq, model_dim, initial_splats
    temperature = 1.0

    key = jax.random.PRNGKey(0)
    k_x, k_c, k_s, k_wv, k_wo = jax.random.split(key, 5)

    x = jax.random.normal(k_x, (B, S, D), dtype=jnp.float32)

    # deterministic parameter init (matching the module's __init__ shapes)
    centers = jax.random.normal(k_c, (K, D), dtype=jnp.float32) * 0.02     # splat positions
    scales = 0.4 + jax.random.uniform(k_s, (K,), dtype=jnp.float32) * 0.6  # scale in [0.4, 1.0)
    xavier = math.sqrt(6.0 / (D + D))                                      # xavier_uniform_
    wv = jax.random.uniform(k_wv, (D, D), dtype=jnp.float32, minval=-xavier, maxval=xavier)
    wo = jax.random.uniform(k_wo, (D, D), dtype=jnp.float32, minval=-xavier, maxval=xavier)

    ref = reference_forward(x, centers, scales, wv, wo, temperature)
    ref_scale = float(jnp.max(jnp.abs(ref))) + 1e-12

    fwd = jax.jit(splat_attention_forward, static_argnames=("temperature", "block_s"))

    # 1) default production tiling (single S tile at this small S)
    out = jax.block_until_ready(fwd(x, centers, scales, wv, wo,
                                    temperature=temperature))
    assert out.shape == (B, S, D)
    err = float(jnp.max(jnp.abs(out - ref))) / ref_scale
    assert err < 5e-3, f"mismatch vs reference (default tiling): rel-max-err={err:.3e}"

    # 2) small tile to exercise the multi-tile accumulation + S padding paths
    out2 = jax.block_until_ready(fwd(x, centers, scales, wv, wo,
                                     temperature=temperature, block_s=64))
    err2 = float(jnp.max(jnp.abs(out2 - ref))) / ref_scale
    assert err2 < 5e-3, f"mismatch vs reference (multi-tile): rel-max-err={err2:.3e}"

    print("KERNEL_OK")
</pallas_src>

<mosaic_0001>
module attributes {stable_mosaic.version = 11 : i64} {
  func.func @_splat_output_kernel(%arg0: i32, %arg1: i32, %arg2: memref<1x152x16xf32, #tpu.memory_space<vmem>>, %arg3: memref<1x16x48xf32, #tpu.memory_space<vmem>>, %arg4: memref<1x152x48xf32, #tpu.memory_space<vmem>>) attributes {dimension_semantics = [#tpu.dimension_semantics<parallel>, #tpu.dimension_semantics<parallel>], iteration_bounds = array<i64: 2, 1>, scalar_prefetch = 0 : i64, scratch_operands = 0 : i64, tpu.core_type = #tpu.core_type<tc>, window_params = [{transform_indices = @transform_0, window_bounds = array<i64: 1, 152, 16>}, {transform_indices = @transform_1, window_bounds = array<i64: 1, 16, 48>}, {transform_indices = @transform_2, window_bounds = array<i64: 1, 152, 48>}]} {
    %c0 = arith.constant 0 : index
    %c0_0 = arith.constant 0 : index
    %c0_1 = arith.constant 0 : index
    %0 = vector.load %arg2[%c0, %c0_0, %c0_1] : memref<1x152x16xf32, #tpu.memory_space<vmem>>, vector<1x152x16xf32>
    %1 = vector.shape_cast %0 : vector<1x152x16xf32> to vector<152x16xf32>
    %c0_2 = arith.constant 0 : index
    %c0_3 = arith.constant 0 : index
    %c0_4 = arith.constant 0 : index
    %2 = vector.load %arg3[%c0_2, %c0_3, %c0_4] : memref<1x16x48xf32, #tpu.memory_space<vmem>>, vector<1x16x48xf32>
    %3 = vector.shape_cast %2 : vector<1x16x48xf32> to vector<16x48xf32>
    %cst = arith.constant dense<0.000000e+00> : vector<152x48xf32>
    %4 = tpu.matmul %1, %3, %cst {dimension_numbers = #tpu.dot_dimension_numbers<[1], [0], [0], [1], [0, 0, 1, 1], [], []>} : vector<152x16xf32>, vector<16x48xf32>, vector<152x48xf32> -> vector<152x48xf32>
    %c0_5 = arith.constant 0 : index
    %c0_6 = arith.constant 0 : index
    %c0_7 = arith.constant 0 : index
    %5 = vector.load %arg4[%c0_5, %c0_6, %c0_7] : memref<1x152x48xf32, #tpu.memory_space<vmem>>, vector<1x152x48xf32>
    %6 = vector.shape_cast %5 : vector<1x152x48xf32> to vector<152x48xf32>
    %7 = vector.shape_cast %4 : vector<152x48xf32> to vector<1x152x48xf32>
    tpu.vector_store %arg4[%c0_5, %c0_6, %c0_7], %7 {strides = array<i32>} : memref<1x152x48xf32, #tpu.memory_space<vmem>>, vector<1x152x48xf32>,
    return
  }
  func.func @transform_0(%arg0: i32, %arg1: i32) -> (i32, i32, i32) {
    %c0_i32 = arith.constant 0 : i32
    %c0_i32_0 = arith.constant 0 : i32
    return %arg0, %arg1, %c0_i32 : i32, i32, i32
  }
  func.func @transform_1(%arg0: i32, %arg1: i32) -> (i32, i32, i32) {
    %c0_i32 = arith.constant 0 : i32
    %c0_i32_0 = arith.constant 0 : i32
    %c0_i32_1 = arith.constant 0 : i32
    return %arg0, %c0_i32, %c0_i32_0 : i32, i32, i32
  }
  func.func @transform_2(%arg0: i32, %arg1: i32) -> (i32, i32, i32) {
    %c0_i32 = arith.constant 0 : i32
    %c0_i32_0 = arith.constant 0 : i32
    return %arg0, %arg1, %c0_i32 : i32, i32, i32
  }
}

module attributes {stable_mosaic.version = 11 : i64} {
  func.func @_splat_state_kernel(%arg0: i32, %arg1: i32, %arg2: memref<1x152x48xf32, #tpu.memory_space<vmem>>, %arg3: memref<16x48xf32, #tpu.memory_space<vmem>>, %arg4: memref<1x16xf32, #tpu.memory_space<vmem>>, %arg5: memref<1x16xf32, #tpu.memory_space<vmem>>, %arg6: memref<1x16x48xf32, #tpu.memory_space<vmem>>, %arg7: memref<1x152x16xf32, #tpu.memory_space<vmem>>) attributes {dimension_semantics = [#tpu.dimension_semantics<parallel>, #tpu.dimension_semantics<arbitrary>], iteration_bounds = array<i64: 2, 1>, scalar_prefetch = 0 : i64, scratch_operands = 0 : i64, tpu.core_type = #tpu.core_type<tc>, window_params = [{transform_indices = @transform_0, window_bounds = array<i64: 1, 152, 48>}, {pipeline_mode = #tpu.pipeline_mode<synchronous>, transform_indices = @transform_1, window_bounds = array<i64: 16, 48>}, {pipeline_mode = #tpu.pipeline_mode<synchronous>, transform_indices = @transform_2, window_bounds = array<i64: 1, 16>}, {pipeline_mode = #tpu.pipeline_mode<synchronous>, transform_indices = @transform_3, window_bounds = array<i64: 1, 16>}, {transform_indices = @transform_4, window_bounds = array<i64: 1, 16, 48>}, {transform_indices = @transform_5, window_bounds = array<i64: 1, 152, 16>}]} {
    %c0 = arith.constant 0 : index
    %c0_0 = arith.constant 0 : index
    %c0_1 = arith.constant 0 : index
    %0 = vector.load %arg2[%c0, %c0_0, %c0_1] : memref<1x152x48xf32, #tpu.memory_space<vmem>>, vector<1x152x48xf32>
    %1 = vector.shape_cast %0 : vector<1x152x48xf32> to vector<152x48xf32>
    %c0_2 = arith.constant 0 : index
    %c0_3 = arith.constant 0 : index
    %2 = vector.load %arg3[%c0_2, %c0_3] : memref<16x48xf32, #tpu.memory_space<vmem>>, vector<16x48xf32>
    %c0_4 = arith.constant 0 : index
    %c0_5 = arith.constant 0 : index
    %3 = vector.load %arg4[%c0_4, %c0_5] : memref<1x16xf32, #tpu.memory_space<vmem>>, vector<1x16xf32>
    %c0_6 = arith.constant 0 : index
    %c0_7 = arith.constant 0 : index
    %4 = vector.load %arg5[%c0_6, %c0_7] : memref<1x16xf32, #tpu.memory_space<vmem>>, vector<1x16xf32>
    %5 = arith.mulf %1, %1 : vector<152x48xf32>
    %cst = arith.constant dense<0.000000e+00> : vector<152xf32>
    %6 = vector.multi_reduction <add>, %5, %cst [1] : vector<152x48xf32> to vector<152xf32>
    %7 = vector.shape_cast %6 : vector<152xf32> to vector<152x1xf32>
    %cst_8 = arith.constant dense<0.000000e+00> : vector<152x16xf32>
    %8 = tpu.matmul %1, %2, %cst_8 {dimension_numbers = #tpu.dot_dimension_numbers<[1], [1], [0], [0], [0, 0, 1, 0], [], []>} : vector<152x48xf32>, vector<16x48xf32>, vector<152x16xf32> -> vector<152x16xf32>
    %cst_9 = arith.constant 2.000000e+00 : f32
    %9 = vector.broadcast %cst_9 : f32 to vector<152x16xf32>
    %10 = arith.mulf %9, %8 : vector<152x16xf32>
    %11 = vector.broadcast %7 : vector<152x1xf32> to vector<152x16xf32>
    %12 = arith.subf %11, %10 : vector<152x16xf32>
    %13 = vector.broadcast %4 : vector<1x16xf32> to vector<152x16xf32>
    %14 = arith.addf %12, %13 : vector<152x16xf32>
    %cst_10 = arith.constant 0.000000e+00 : f32
    %15 = vector.broadcast %cst_10 : f32 to vector<152x16xf32>
    %16 = arith.maximumf %14, %15 : vector<152x16xf32>
    %17 = vector.broadcast %3 : vector<1x16xf32> to vector<152x16xf32>
    %18 = arith.mulf %17, %16 : vector<152x16xf32>
    %19 = math.exp %18 : vector<152x16xf32>
    %cst_11 = arith.constant dense<0.000000e+00> : vector<152xf32>
    %20 = vector.multi_reduction <add>, %19, %cst_11 [1] : vector<152x16xf32> to vector<152xf32>
    %21 = vector.shape_cast %20 : vector<152xf32> to vector<152x1xf32>
    %cst_12 = arith.constant 9.99999993E-9 : f32
    %22 = vector.broadcast %cst_12 : f32 to vector<152x1xf32>
    %23 = arith.addf %21, %22 : vector<152x1xf32>
    %24 = vector.broadcast %23 : vector<152x1xf32> to vector<152x16xf32>
    %25 = arith.divf %19, %24 : vector<152x16xf32>
    %c0_13 = arith.constant 0 : index
    %c0_14 = arith.constant 0 : index
    %c0_15 = arith.constant 0 : index
    %26 = vector.load %arg7[%c0_13, %c0_14, %c0_15] : memref<1x152x16xf32, #tpu.memory_space<vmem>>, vector<1x152x16xf32>
    %27 = vector.shape_cast %26 : vector<1x152x16xf32> to vector<152x16xf32>
    %28 = vector.shape_cast %25 : vector<152x16xf32> to vector<1x152x16xf32>
    tpu.vector_store %arg7[%c0_13, %c0_14, %c0_15], %28 {strides = array<i32>} : memref<1x152x16xf32, #tpu.memory_space<vmem>>, vector<1x152x16xf32>,
    %c0_i32 = arith.constant 0 : i32
    %29 = arith.cmpi eq, %arg1, %c0_i32 : i32
    %30 = arith.extui %29 : i1 to i32
    %c0_i32_16 = arith.constant 0 : i32
    %31 = arith.cmpi ne, %30, %c0_i32_16 : i32
    scf.if %31 {
      %cst_24 = arith.constant 0.000000e+00 : f32
      %39 = vector.broadcast %cst_24 : f32 to vector<16x48xf32>
      %c0_25 = arith.constant 0 : index
      %c0_26 = arith.constant 0 : index
      %c0_27 = arith.constant 0 : index
      %40 = vector.load %arg6[%c0_25, %c0_26, %c0_27] : memref<1x16x48xf32, #tpu.memory_space<vmem>>, vector<1x16x48xf32>
      %41 = vector.shape_cast %40 : vector<1x16x48xf32> to vector<16x48xf32>
      %42 = vector.shape_cast %39 : vector<16x48xf32> to vector<1x16x48xf32>
      tpu.vector_store %arg6[%c0_25, %c0_26, %c0_27], %42 {strides = array<i32>} : memref<1x16x48xf32, #tpu.memory_space<vmem>>, vector<1x16x48xf32>,
    } else {
    }
    %c0_17 = arith.constant 0 : index
    %c0_18 = arith.constant 0 : index
    %c0_19 = arith.constant 0 : index
    %32 = vector.load %arg6[%c0_17, %c0_18, %c0_19] : memref<1x16x48xf32, #tpu.memory_space<vmem>>, vector<1x16x48xf32>
    %33 = vector.shape_cast %32 : vector<1x16x48xf32> to vector<16x48xf32>
    %cst_20 = arith.constant dense<0.000000e+00> : vector<16x48xf32>
    %34 = tpu.matmul %25, %1, %cst_20 {dimension_numbers = #tpu.dot_dimension_numbers<[0], [0], [1], [1], [0, 1, 1, 1], [], []>} : vector<152x16xf32>, vector<152x48xf32>, vector<16x48xf32> -> vector<16x48xf32>
    %35 = arith.addf %33, %34 : vector<16x48xf32>
    %c0_21 = arith.constant 0 : index
    %c0_22 = arith.constant 0 : index
    %c0_23 = arith.constant 0 : index
    %36 = vector.load %arg6[%c0_21, %c0_22, %c0_23] : memref<1x16x48xf32, #tpu.memory_space<vmem>>, vector<1x16x48xf32>
    %37 = vector.shape_cast %36 : vector<1x16x48xf32> to vector<16x48xf32>
    %38 = vector.shape_cast %35 : vector<16x48xf32> to vector<1x16x48xf32>
    tpu.vector_store %arg6[%c0_21, %c0_22, %c0_23], %38 {strides = array<i32>} : memref<1x16x48xf32, #tpu.memory_space<vmem>>, vector<1x16x48xf32>,
    return
  }
  func.func @transform_0(%arg0: i32, %arg1: i32) -> (i32, i32, i32) {
    %c0_i32 = arith.constant 0 : i32
    %c0_i32_0 = arith.constant 0 : i32
    return %arg0, %arg1, %c0_i32 : i32, i32, i32
  }
  func.func @transform_1(%arg0: i32, %arg1: i32) -> (i32, i32) {
    %c0_i32 = arith.constant 0 : i32
    %c0_i32_0 = arith.constant 0 : i32
    %c0_i32_1 = arith.constant 0 : i32
    return %c0_i32, %c0_i32_0 : i32, i32
  }
  func.func @transform_2(%arg0: i32, %arg1: i32) -> (i32, i32) {
    %c0_i32 = arith.constant 0 : i32
    %c0_i32_0 = arith.constant 0 : i32
    %c0_i32_1 = arith.constant 0 : i32
    return %c0_i32, %c0_i32_0 : i32, i32
  }
  func.func @transform_3(%arg0: i32, %arg1: i32) -> (i32, i32) {
    %c0_i32 = arith.constant 0 : i32
    %c0_i32_0 = arith.constant 0 : i32
    %c0_i32_1 = arith.constant 0 : i32
    return %c0_i32, %c0_i32_0 : i32, i32
  }
  func.func @transform_4(%arg0: i32, %arg1: i32) -> (i32, i32, i32) {
    %c0_i32 = arith.constant 0 : i32
    %c0_i32_0 = arith.constant 0 : i32
    %c0_i32_1 = arith.constant 0 : i32
    return %arg0, %c0_i32, %c0_i32_0 : i32, i32, i32
  }
  func.func @transform_5(%arg0: i32, %arg1: i32) -> (i32, i32, i32) {
    %c0_i32 = arith.constant 0 : i32
    %c0_i32_0 = arith.constant 0 : i32
    return %arg0, %arg1, %c0_i32 : i32, i32, i32
  }
}

</mosaic_0001>

<bundles_post_ra>
// kernel: splat_attention_forward.3
= control target key start
LH: loop header
LB: loop body
LE: loop exit
PB: predicated region body
PF: predicated region fallthrough
CT: control target
= control target key end

     0   :  { %s746_s9 = smov 0   ;;  %s748_s10 = smov 0   ;;  %s912_s0 = inlined_call_operand.vmem [shape: f32[2,152,16], index: 0, kind: input, shape index: {}]   ;;  %s913_s1 = inlined_call_operand.vmem [shape: f32[2,16,48], index: 1, kind: input, shape index: {}]   ;;  %s914_s2 = inlined_call_operand.vmem [shape: f32[2,152,48], index: 2, kind: output, shape index: {}]  }
   0x1   :  { %s750_s11 = smov 0  }
   0x2 LB: > { %s24_s12 = sadd.s32 1, %s723_s10  ;;  %p565_p0 = scmp.ge.s32.totalorder %s727_s11, 1  ;;  %s727_s11 = sphi %s750_s11, %s12_s11   ;;  %s723_s10 = sphi %s748_s10, %s916_s10   ;;  %s719_s9 = sphi %s746_s9, %s915_s9  }
   0x3   : > { %p26_p1 = scmp.ge.s32.totalorder %s24_s12, 2  ;;  %p143_p2 = scmp.lt.s32.totalorder %s727_s11, 3 }
   0x5   : > { %s918_s12 = smov (%p26_p1, %s24_s12), 0  ;;  %p144_p3 = pnand %p565_p0, %p143_p2 }
   0x6   : > { %p179_p4 = scmp.lt.s32.totalorder (!%p144_p3), %s719_s9, 1 }
   0x7   : > { %147 = sbr.rel (%p144_p3) target bundleno = 250 (0xfa), region = 28 }
   0xc   : > { %v729_v0 = vmov 0.0   ;;  %s920_s9 = smov (!%p179_p4, %s719_s9), 1  ;;  %vm730_vm0 = vmmov 0   ;;  %vm224_vm1 = vcmask 130048   ;;  %vm442_vm2 = vcmask 392192  }
   0xd   : > { %613 = vmatprep.subr.mxu0 %v729_v0  ;;  %674 = vmatprep.subr.mxu1 %v729_v0  ;;  %s678_s13 = smul.u32 152, %s920_s9  ;;  %s591_s14 = sshll.u32 %s920_s9, 4 }
   0xe   : > { %617 = vmatprep.mubr.msk.f32.mxu0 %vm730_vm0, %v729_v0  ;;  %647 = vmatprep.mubr.msk.f32.mxu1 %vm730_vm0, %v729_v0  ;;  %s192_s17 = scalar_lea.vmem %s913_s1, %s591_s14 }
   0xf   : > { %s782_s20 = scalar_lea.vmem %s912_s0, %s678_s13  ;;  %v223_v1 = vld [vmem:[%s192_s17 + $0x8] sm:$0xff]  ;;  %v222_v2 = vld [vmem:[%s192_s17] sm:$0xff]  ;;  %s863_s23 = scalar_lea.vmem %s914_s2, %s678_s13 }
  0x10   : > { %614 = vmatpush3.msra.mxu0 %v223_v1  ;;  %676 = vmatpush3.msra.mxu1 %v223_v1  ;;  %v203_v3 = vld [vmem:[%s782_s20] sm:$0xff]  ;;  %v213_v4 = vld [vmem:[%s782_s20 + $0x50] sm:$0xff]  ;;  %v204_v5 = vld [vmem:[%s782_s20 + $0x8] sm:$0xff] }
  0x11   : > { %615 = vmatprep.subr.mxu0 %v729_v0  ;;  %675 = vmatprep.subr.mxu1 %v729_v0  ;;  %v214_v6 = vld [vmem:[%s782_s20 + $0x58] sm:$0xff]  ;;  %v205_v7 = vld [vmem:[%s782_s20 + $0x10] sm:$0xff]  ;;  %v215_v8 = vld [vmem:[%s782_s20 + $0x60] sm:$0xff] }
  0x12   : > { %616 = vmatpush3.msra.mxu0 %v222_v2  ;;  %677 = vmatpush3.msra.mxu1 %v222_v2  ;;  %v206_v9 = vld [vmem:[%s782_s20 + $0x18] sm:$0xff]  ;;  %v216_v10 = vld [vmem:[%s782_s20 + $0x68] sm:$0xff]  ;;  %v207_v11 = vld [vmem:[%s782_s20 + $0x20] sm:$0xff] }
  0x13   : > { %618 = vmatmul.mubr.msk.f32.vlgmr.msra.gmra.mxu0 %vm224_vm1, %v203_v3  ;;  %648 = vmatmul.mubr.msk.f32.vlgmr.msra.gmra.mxu1 %vm224_vm1, %v213_v4  ;;  %v217_v12 = vld [vmem:[%s782_s20 + $0x70] sm:$0xff]  ;;  %v208_v13 = vld [vmem:[%s782_s20 + $0x28] sm:$0xff]  ;;  %v218_v14 = vld [vmem:[%s782_s20 + $0x78] sm:$0xff] }
  0x14   : > { %620 = vmatprep.mubr.msk.f32.mxu0 %vm730_vm0, %v729_v0  ;;  %650 = vmatprep.mubr.msk.f32.mxu1 %vm730_vm0, %v729_v0  ;;  %v209_v15 = vld [vmem:[%s782_s20 + $0x30] sm:$0xff]  ;;  %v219_v16 = vld [vmem:[%s782_s20 + $0x80] sm:$0xff]  ;;  %v210_v17 = vld [vmem:[%s782_s20 + $0x38] sm:$0xff] }
  0x15   : > { %v220_v18 = vld [vmem:[%s782_s20 + $0x88] sm:$0xff]  ;;  %v211_v19 = vld [vmem:[%s782_s20 + $0x40] sm:$0xff]  ;;  %v221_v20 = vld [vmem:[%s782_s20 + $0x90] sm:$0xff] }
  0x16   : > { %v212_v21 = vld [vmem:[%s782_s20 + $0x48] sm:$0xff] }
  0x17   : > { %621 = vmatmul.mubr.msk.f32.gmra.mxu0 %vm224_vm1, %v204_v5  ;;  %651 = vmatmul.mubr.msk.f32.gmra.mxu1 %vm224_vm1, %v214_v6 }
  0x18   : > { %623 = vmatprep.mubr.msk.f32.mxu0 %vm730_vm0, %v729_v0  ;;  %653 = vmatprep.mubr.msk.f32.mxu1 %vm730_vm0, %v729_v0 }
  0x1b   : > { %624 = vmatmul.mubr.msk.f32.gmra.mxu0 %vm224_vm1, %v205_v7  ;;  %654 = vmatmul.mubr.msk.f32.gmra.mxu1 %vm224_vm1, %v215_v8 }
  0x1c   : > { %626 = vmatprep.mubr.msk.f32.mxu0 %vm730_vm0, %v729_v0  ;;  %656 = vmatprep.mubr.msk.f32.mxu1 %vm730_vm0, %v729_v0 }
  0x1f   : > { %627 = vmatmul.mubr.msk.f32.gmra.mxu0 %vm224_vm1, %v206_v9  ;;  %657 = vmatmul.mubr.msk.f32.gmra.mxu1 %vm224_vm1, %v216_v10 }
  0x20   : > { %629 = vmatprep.mubr.msk.f32.mxu0 %vm730_vm0, %v729_v0  ;;  %659 = vmatprep.mubr.msk.f32.mxu1 %vm730_vm0, %v729_v0 }
  0x23   : > { %630 = vmatmul.mubr.msk.f32.gmra.mxu0 %vm224_vm1, %v207_v11  ;;  %660 = vmatmul.mubr.msk.f32.gmra.mxu1 %vm224_vm1, %v217_v12 }
  0x24   : > { %632 = vmatprep.mubr.msk.f32.mxu0 %vm730_vm0, %v729_v0  ;;  %662 = vmatprep.mubr.msk.f32.mxu1 %vm730_vm0, %v729_v0 }
  0x27   : > { %633 = vmatmul.mubr.msk.f32.gmra.mxu0 %vm224_vm1, %v208_v13  ;;  %663 = vmatmul.mubr.msk.f32.gmra.mxu1 %vm224_vm1, %v218_v14 }
  0x28   : > { %635 = vmatprep.mubr.msk.f32.mxu0 %vm730_vm0, %v729_v0  ;;  %665 = vmatprep.mubr.msk.f32.mxu1 %vm730_vm0, %v729_v0 }
  0x2b   : > { %636 = vmatmul.mubr.msk.f32.gmra.mxu0 %vm224_vm1, %v209_v15  ;;  %666 = vmatmul.mubr.msk.f32.gmra.mxu1 %vm224_vm1, %v219_v16 }
  0x2c   : > { %638 = vmatprep.mubr.msk.f32.mxu0 %vm730_vm0, %v729_v0  ;;  %668 = vmatprep.mubr.msk.f32.mxu1 %vm730_vm0, %v729_v0 }
  0x2f   : > { %639 = vmatmul.mubr.msk.f32.gmra.mxu0 %vm224_vm1, %v210_v17  ;;  %669 = vmatmul.mubr.msk.f32.gmra.mxu1 %vm224_vm1, %v220_v18 }
  0x30   : > { %641 = vmatprep.mubr.msk.f32.mxu0 %vm730_vm0, %v729_v0  ;;  %671 = vmatprep.mubr.msk.f32.mxu1 %vm730_vm0, %v729_v0 }
  0x33   : > { %642 = vmatmul.mubr.msk.f32.gmra.mxu0 %vm224_vm1, %v211_v19  ;;  %672 = vmatmul.mubr.msk.f32.gmra.mxu1 %vm224_vm1, %v221_v20 }
  0x34   : > { %644 = vmatprep.mubr.msk.f32.mxu0 %vm730_vm0, %v729_v0 }
  0x37   : > { %645 = vmatmul.mubr.msk.f32.gmra.mxu0 %vm224_vm1, %v212_v21 }
  0xd3   : > { %v348_v22 = vpop.f32.mrf.mxu0  ;;  %v398_v23 = vpop.f32.mrf.mxu1 }
  0xd4   : > { %443 = vst.msk [vmem:[%s863_s23] sm:$0xff] %vm442_vm2, %v348_v22  ;;  %453 = vst.msk [vmem:[%s863_s23 + $0x50] sm:$0xff] %vm442_vm2, %v398_v23 }
  0xd5   : > { %v619_v24 = vpop.f32.mrf.mxu0  ;;  %v649_v25 = vpop.f32.mrf.mxu1 }
  0xd7   : > { %v353_v26 = vpop.f32.mrf.mxu0  ;;  %v403_v27 = vpop.f32.mrf.mxu1 }
  0xd8   : > { %444 = vst.msk [vmem:[%s863_s23 + $0x8] sm:$0xff] %vm442_vm2, %v353_v26  ;;  %454 = vst.msk [vmem:[%s863_s23 + $0x58] sm:$0xff] %vm442_vm2, %v403_v27 }
  0xd9   : > { %v622_v28 = vpop.f32.mrf.mxu0  ;;  %v652_v29 = vpop.f32.mrf.mxu1 }
  0xdb   : > { %v358_v30 = vpop.f32.mrf.mxu0  ;;  %v408_v31 = vpop.f32.mrf.mxu1 }
  0xdc   : > { %445 = vst.msk [vmem:[%s863_s23 + $0x10] sm:$0xff] %vm442_vm2, %v358_v30  ;;  %455 = vst.msk [vmem:[%s863_s23 + $0x60] sm:$0xff] %vm442_vm2, %v408_v31 }
  0xdd   : > { %v625_v32 = vpop.f32.mrf.mxu0  ;;  %v655_v33 = vpop.f32.mrf.mxu1 }
  0xdf   : > { %v363_v34 = vpop.f32.mrf.mxu0  ;;  %v413_v35 = vpop.f32.mrf.mxu1 }
  0xe0   : > { %446 = vst.msk [vmem:[%s863_s23 + $0x18] sm:$0xff] %vm442_vm2, %v363_v34  ;;  %456 = vst.msk [vmem:[%s863_s23 + $0x68] sm:$0xff] %vm442_vm2, %v413_v35 }
  0xe1   : > { %v628_v36 = vpop.f32.mrf.mxu0  ;;  %v658_v37 = vpop.f32.mrf.mxu1 }
  0xe3   : > { %v368_v38 = vpop.f32.mrf.mxu0  ;;  %v418_v39 = vpop.f32.mrf.mxu1 }
  0xe4   : > { %447 = vst.msk [vmem:[%s863_s23 + $0x20] sm:$0xff] %vm442_vm2, %v368_v38  ;;  %457 = vst.msk [vmem:[%s863_s23 + $0x70] sm:$0xff] %vm442_vm2, %v418_v39 }
  0xe5   : > { %v631_v40 = vpop.f32.mrf.mxu0  ;;  %v661_v41 = vpop.f32.mrf.mxu1 }
  0xe7   : > { %v373_v42 = vpop.f32.mrf.mxu0  ;;  %v423_v43 = vpop.f32.mrf.mxu1 }
  0xe8   : > { %448 = vst.msk [vmem:[%s863_s23 + $0x28] sm:$0xff] %vm442_vm2, %v373_v42  ;;  %458 = vst.msk [vmem:[%s863_s23 + $0x78] sm:$0xff] %vm442_vm2, %v423_v43 }
  0xe9   : > { %v634_v44 = vpop.f32.mrf.mxu0  ;;  %v664_v45 = vpop.f32.mrf.mxu1 }
  0xeb   : > { %v378_v46 = vpop.f32.mrf.mxu0  ;;  %v428_v47 = vpop.f32.mrf.mxu1 }
  0xec   : > { %449 = vst.msk [vmem:[%s863_s23 + $0x30] sm:$0xff] %vm442_vm2, %v378_v46  ;;  %459 = vst.msk [vmem:[%s863_s23 + $0x80] sm:$0xff] %vm442_vm2, %v428_v47 }
  0xed   : > { %v637_v48 = vpop.f32.mrf.mxu0  ;;  %v667_v49 = vpop.f32.mrf.mxu1 }
  0xef   : > { %v383_v50 = vpop.f32.mrf.mxu0  ;;  %v433_v51 = vpop.f32.mrf.mxu1 }
  0xf0   : > { %450 = vst.msk [vmem:[%s863_s23 + $0x38] sm:$0xff] %vm442_vm2, %v383_v50  ;;  %460 = vst.msk [vmem:[%s863_s23 + $0x88] sm:$0xff] %vm442_vm2, %v433_v51 }
  0xf1   : > { %v640_v52 = vpop.f32.mrf.mxu0  ;;  %v670_v53 = vpop.f32.mrf.mxu1 }
  0xf3   : > { %v388_v54 = vpop.f32.mrf.mxu0  ;;  %v438_v55 = vpop.f32.mrf.mxu1 }
  0xf4   : > { %451 = vst.msk [vmem:[%s863_s23 + $0x40] sm:$0xff] %vm442_vm2, %v388_v54  ;;  %461 = vst.msk [vmem:[%s863_s23 + $0x90] sm:$0xff] %vm442_vm2, %v438_v55 }
  0xf5   : > { %v643_v56 = vpop.f32.mrf.mxu0  ;;  %v673_v57 = vpop.f32.mrf.mxu1 }
  0xf7   : > { %v393_v58 = vpop.f32.mrf.mxu0 }
  0xf8   : > { %452 = vst.msk [vmem:[%s863_s23 + $0x48] sm:$0xff] %vm442_vm2, %v393_v58 }
  0xf9   : > { %v646_v59 = vpop.f32.mrf.mxu0 }
  0xfa PF: > { %s12_s11 = sadd.s32 1, %s727_s11   ;;  %s915_s9 = smov %s723_s10 }
  0xfb   : > { %p9_p5 = scmp.ge.s32.totalorder %s12_s11, 4   ;;  %s916_s10 = smov %s918_s12 }
  0xfd   :  { %11 = sbr.rel (!%p9_p5) target bundleno = 2 (0x2), region = 61 }

// kernel: splat_attention_forward.2
= control target key start
LH: loop header
LB: loop body
LE: loop exit
PB: predicated region body
PF: predicated region fallthrough
CT: control target
= control target key end

     0   :  { %s1435_s18 = smov 0   ;;  %s1437_s19 = smov 0   ;;  %s1902_s0 = inlined_call_operand.vmem [shape: f32[2,152,48], index: 0, kind: input, shape index: {}]   ;;  %s1903_s1 = inlined_call_operand.vmem [shape: f32[16,48], index: 1, kind: input, shape index: {}]   ;;  %s1904_s2 = inlined_call_operand.vmem [shape: f32[1,16], index: 2, kind: input, shape index: {}]   ;;  %s1905_s3 = inlined_call_operand.vmem [shape: f32[1,16], index: 3, kind: input, shape index: {}]   ;;  %s1906_s4 = inlined_call_operand.vmem [shape: f32[2,16,48], index: 4, kind: output, shape index: {0}]   ;;  %s1907_s5 = inlined_call_operand.vmem [shape: f32[2,152,16], index: 5, kind: output, shape index: {1}]  }
   0x1   :  { %s1439_s20 = smov 0  }
   0x2 LB: > { %s28_s21 = sadd.s32 1, %s1397_s19  ;;  %p1161_p0 = scmp.ge.s32.totalorder %s1401_s20, 1  ;;  %s1401_s20 = sphi %s1439_s20, %s16_s20   ;;  %s1397_s19 = sphi %s1437_s19, %s1909_s19   ;;  %s1393_s18 = sphi %s1435_s18, %s1908_s18  }
   0x3   : > { %p30_p1 = scmp.ge.s32.totalorder %s28_s21, 2  ;;  %p211_p2 = scmp.lt.s32.totalorder %s1401_s20, 3 }
   0x5   : > { %s1911_s21 = smov (%p30_p1, %s28_s21), 0  ;;  %p212_p3 = pnand %p1161_p0, %p211_p2 }
   0x6   : > { %p253_p4 = scmp.lt.s32.totalorder (!%p212_p3), %s1393_s18, 1 }
   0x7   : > { %215 = sbr.rel (%p212_p3) target bundleno = 787 (0x313), region = 36 }
   0xc   : > { %v297_v0 = vld [vmem:[%s1903_s1 + $0x8] sm:$0xff]  ;;  %vm319_vm0 = vcmask 392192   ;;  %v1403_v1 = vmov 0.0   ;;  %vm1404_vm1 = vmmov 0   ;;  %s1913_s18 = smov (!%p253_p4, %s1393_s18), 1  ;;  %v296_v2 = vld [vmem:[%s1903_s1] sm:$0xff] }
   0xd   : > { %1215 = vmatprep.subr.mxu0 %v1403_v1  ;;  %1219 = vmatprep.mubr.msk.f32.mxu0 %vm1404_vm1, %v1403_v1  ;;  %s1276_s26 = smul.u32 152, %s1913_s18  ;;  %vm745_vm2 = vcmask 130048   ;;  %s1193_s12 = sshll.u32 %s1913_s18, 4  ;;  %vm951_vm3 = vcmask 195584  }
   0xe   : > { %1216 = vmatpush3.xpose.msk.msra.mxu0 %vm319_vm0, %v297_v0  ;;  %958 = vmatprep.subr.mxu1 %v1403_v1  ;;  %v1698_v0 = vld [vmem:[%s1905_s3] ss:$0 sm:$0xff]  ;;  %s266_s15 = scalar_lea.vmem %s1906_s4, %s1193_s12 }
   0xf   : > { %1217 = vmatprep.subr.mxu0 %v1403_v1  ;;  %s1474_s29 = scalar_lea.vmem %s1902_s0, %s1276_s26  ;;  %s1824_s11 = scalar_lea.vmem %s1907_s5, %s1276_s26  ;;  %883 = vst.msk [vmem:[%s266_s15] sm:$0xff] %vm319_vm0, %v1403_v1  ;;  %884 = vst.msk [vmem:[%s266_s15 + $0x8] sm:$0xff] %vm319_vm0, %v1403_v1 }
  0x10   : > { %v1477_v3 = vld [vmem:[%s1474_s29] sm:$0xff]  ;;  %v1480_v4 = vld [vmem:[%s1474_s29 + $0x8] sm:$0xff]  ;;  %v1483_v5 = vld [vmem:[%s1474_s29 + $0x10] sm:$0xff] }
  0x11   : > { %v1486_v6 = vld [vmem:[%s1474_s29 + $0x18] sm:$0xff]  ;;  %v300_v7 = vmul.f32 %v1477_v3, %v1477_v3  ;;  %v301_v8 = vmul.f32 %v1480_v4, %v1480_v4  ;;  %v302_v9 = vmul.f32 %v1483_v5, %v1483_v5  ;;  %v1503_v13 = vld [vmem:[%s1474_s29 + $0x20] sm:$0xff]  ;;  %v1506_v14 = vld [vmem:[%s1474_s29 + $0x28] sm:$0xff] }
  0x12   : > { %1218 = vmatpush3.xpose.msk.msra.mxu0 %vm319_vm0, %v296_v2  ;;  %v303_v10 = vmul.f32 %v1486_v6, %v1486_v6  ;;  %v1509_v15 = vld [vmem:[%s1474_s29 + $0x78] sm:$0xff]  ;;  %v304_v18 = vmul.f32 %v1503_v13, %v1503_v13  ;;  %v305_v19 = vmul.f32 %v1506_v14, %v1506_v14  ;;  %v1524_v20 = vld [vmem:[%s1474_s29 + $0x30] sm:$0xff]  ;;  %v1542_v27 = vld [vmem:[%s1474_s29 + $0x68] sm:$0xff] }
  0x13   : > { %v320_v11 = vsel %vm319_vm0, %v300_v7, 0.0  ;;  %v326_v12 = vsel %vm319_vm0, %v302_v9, 0.0  ;;  %v323_v16 = vsel %vm319_vm0, %v301_v8, 0.0  ;;  %959 = vmatpush1.msra.mxu1 %v1509_v15  ;;  %v1527_v21 = vld [vmem:[%s1474_s29 + $0x38] sm:$0xff]  ;;  %v1530_v22 = vld [vmem:[%s1474_s29 + $0x70] sm:$0xff]  ;;  %v306_v25 = vmul.f32 %v1524_v20, %v1524_v20  ;;  %v1549_v28 = vld [vmem:[%s1474_s29 + $0x40] sm:$0xff] }
  0x14   : > { %321 = vadd.xlane.f32.xlu0 %v320_v11  ;;  %327 = vadd.xlane.f32.xlu1 %v326_v12  ;;  %v329_v17 = vsel %vm319_vm0, %v303_v10, 0.0  ;;  %v332_v23 = vsel %vm319_vm0, %v304_v18, 0.0  ;;  %v335_v24 = vsel %vm319_vm0, %v305_v19, 0.0  ;;  %v307_v26 = vmul.f32 %v1527_v21, %v1527_v21  ;;  %v1552_v29 = vld [vmem:[%s1474_s29 + $0x48] sm:$0xff]  ;;  %v1555_v30 = vld [vmem:[%s1474_s29 + $0x60] sm:$0xff]  ;;  %v1571_v35 = vld [vmem:[%s1474_s29 + $0x50] sm:$0xff] }
  0x15   : > { %1220 = vmatmul.mubr.msk.f32.vlgmr.msra.gmra.mxu0 %vm319_vm0, %v1477_v3  ;;  %960 = vmatprep.subr.mxu1 %v1403_v1  ;;  %v338_v31 = vsel %vm319_vm0, %v306_v25, 0.0  ;;  %v308_v33 = vmul.f32 %v1549_v28, %v1549_v28  ;;  %v309_v34 = vmul.f32 %v1552_v29, %v1552_v29  ;;  %v1574_v36 = vld [vmem:[%s1474_s29 + $0x58] sm:$0xff]  ;;  %v310_v39 = vmul.f32 %v1571_v35, %v1571_v35  ;;  %v1590_v41 = vld [vmem:[%s1474_s29 + $0x80] sm:$0xff]  ;;  %v1606_v46 = vld [vmem:[%s1474_s29 + $0x88] sm:$0xff] }
  0x16   : > { %1222 = vmatprep.mubr.msk.f32.mxu0 %vm1404_vm1, %v1403_v1  ;;  %961 = vmatpush1.msra.mxu1 %v1530_v22  ;;  %v341_v32 = vsel %vm319_vm0, %v307_v26, 0.0  ;;  %v311_v40 = vmul.f32 %v1574_v36, %v1574_v36  ;;  %v312_v44 = vmul.f32 %v1555_v30, %v1555_v30  ;;  %v316_v45 = vmul.f32 %v1590_v41, %v1590_v41  ;;  %v295_v51 = vld [vmem:[%s1474_s29 + $0x90] sm:$0xff]  ;;  %v1704_v7 = vld [vmem:[%s1904_s2] ss:$0 sm:$0xff] }
  0x17   : > { %962 = vmatprep.subr.mxu1 %v1403_v1  ;;  %v344_v37 = vsel %vm319_vm0, %v308_v33, 0.0  ;;  %v347_v38 = vsel %vm319_vm0, %v309_v34, 0.0  ;;  %v350_v42 = vsel %vm319_vm0, %v310_v39, 0.0  ;;  %v313_v48 = vmul.f32 %v1542_v27, %v1542_v27 }
  0x18   : > { %324 = vadd.xlane.f32.xlu0 %v323_v16  ;;  %330 = vadd.xlane.f32.xlu1 %v329_v17  ;;  %v353_v43 = vsel %vm319_vm0, %v311_v40, 0.0  ;;  %v356_v47 = vsel %vm319_vm0, %v312_v44, 0.0  ;;  %v368_v49 = vsel %vm319_vm0, %v316_v45, 0.0  ;;  %v317_v50 = vmul.f32 %v1606_v46, %v1606_v46 }
  0x19   : > { %1223 = vmatmul.mubr.msk.f32.gmra.mxu0 %vm319_vm0, %v1480_v4  ;;  %963 = vmatpush1.msra.mxu1 %v1542_v27  ;;  %v359_v52 = vsel %vm319_vm0, %v313_v48, 0.0  ;;  %v314_v53 = vmul.f32 %v1530_v22, %v1530_v22  ;;  %v318_v55 = vmul.f32 %v295_v51, %v295_v51  ;;  %v315_v57 = vmul.f32 %v1509_v15, %v1509_v15 }
  0x1a   : > { %1225 = vmatprep.mubr.msk.f32.mxu0 %vm1404_vm1, %v1403_v1  ;;  %964 = vmatprep.subr.mxu1 %v1403_v1  ;;  %v371_v54 = vsel %vm319_vm0, %v317_v50, 0.0 }
  0x1b   : > { %965 = vmatpush1.msra.mxu1 %v1555_v30  ;;  %v362_v56 = vsel %vm319_vm0, %v314_v53, 0.0  ;;  %v374_v58 = vsel %vm319_vm0, %v318_v55, 0.0  ;;  %v365_v59 = vsel %vm319_vm0, %v315_v57, 0.0 }
  0x1c   : > { %333 = vadd.xlane.f32.xlu0 %v332_v23  ;;  %336 = vadd.xlane.f32.xlu1 %v335_v24 }
  0x1d   : > { %1226 = vmatmul.mubr.msk.f32.gmra.mxu0 %vm319_vm0, %v1483_v5  ;;  %966 = vmatprep.subr.mxu1 %v1403_v1 }
  0x1e   : > { %1228 = vmatprep.mubr.msk.f32.mxu0 %vm1404_vm1, %v1403_v1  ;;  %967 = vmatpush1.msra.mxu1 %v1574_v36 }
  0x1f   : > { %968 = vmatprep.subr.mxu1 %v1403_v1 }
  0x20   : > { %339 = vadd.xlane.f32.xlu0 %v338_v31  ;;  %342 = vadd.xlane.f32.xlu1 %v341_v32 }
  0x21   : > { %1229 = vmatmul.mubr.msk.f32.gmra.mxu0 %vm319_vm0, %v1486_v6  ;;  %969 = vmatpush1.msra.mxu1 %v1571_v35 }
  0x22   : > { %1231 = vmatprep.mubr.msk.f32.mxu0 %vm1404_vm1, %v1403_v1  ;;  %970 = vmatprep.subr.mxu1 %v1403_v1 }
  0x23   : > { %971 = vmatpush1.msra.mxu1 %v1552_v29 }
  0x24   : > { %345 = vadd.xlane.f32.xlu0 %v344_v37  ;;  %348 = vadd.xlane.f32.xlu1 %v347_v38 }
  0x25   : > { %1232 = vmatmul.mubr.msk.f32.gmra.mxu0 %vm319_vm0, %v1503_v13  ;;  %972 = vmatprep.subr.mxu1 %v1403_v1 }
  0x26   : > { %1234 = vmatprep.mubr.msk.f32.mxu0 %vm1404_vm1, %v1403_v1  ;;  %973 = vmatpush1.msra.mxu1 %v1549_v28 }
  0x27   : > { %974 = vmatprep.subr.mxu1 %v1403_v1 }
  0x28   : > { %351 = vadd.xlane.f32.xlu0 %v350_v42  ;;  %354 = vadd.xlane.f32.xlu1 %v353_v43 }
  0x29   : > { %1235 = vmatmul.mubr.msk.f32.gmra.mxu0 %vm319_vm0, %v1506_v14  ;;  %975 = vmatpush1.msra.mxu1 %v1527_v21 }
  0x2a   : > { %1237 = vmatprep.mubr.msk.f32.mxu0 %vm1404_vm1, %v1403_v1  ;;  %976 = vmatprep.subr.mxu1 %v1403_v1 }
  0x2b   : > { %977 = vmatpush1.msra.mxu1 %v1524_v20 }
  0x2c   : > { %357 = vadd.xlane.f32.xlu0 %v356_v47  ;;  %369 = vadd.xlane.f32.xlu1 %v368_v49 }
  0x2d   : > { %1238 = vmatmul.mubr.msk.f32.gmra.mxu0 %vm319_vm0, %v1524_v20  ;;  %978 = vmatprep.subr.mxu1 %v1403_v1 }
  0x2e   : > { %1240 = vmatprep.mubr.msk.f32.mxu0 %vm1404_vm1, %v1403_v1  ;;  %979 = vmatpush1.msra.mxu1 %v1506_v14 }
  0x2f   : > { %980 = vmatprep.subr.mxu1 %v1403_v1 }
  0x30   : > { %360 = vadd.xlane.f32.xlu0 %v359_v52  ;;  %372 = vadd.xlane.f32.xlu1 %v371_v54 }
  0x31   : > { %1241 = vmatmul.mubr.msk.f32.gmra.mxu0 %vm319_vm0, %v1527_v21  ;;  %981 = vmatpush1.msra.mxu1 %v1503_v13 }
  0x32   : > { %1243 = vmatprep.mubr.msk.f32.mxu0 %vm1404_vm1, %v1403_v1  ;;  %982 = vmatprep.subr.mxu1 %v1403_v1 }
  0x33   : > { %983 = vmatpush1.msra.mxu1 %v1486_v6 }
  0x34   : > { %363 = vadd.xlane.f32.xlu0 %v362_v56  ;;  %375 = vadd.xlane.f32.xlu1 %v374_v58 }
  0x35   : > { %1244 = vmatmul.mubr.msk.f32.gmra.mxu0 %vm319_vm0, %v1549_v28  ;;  %984 = vmatprep.subr.mxu1 %v1403_v1 }
  0x36   : > { %1246 = vmatprep.mubr.msk.f32.mxu0 %vm1404_vm1, %v1403_v1  ;;  %985 = vmatpush1.msra.mxu1 %v1483_v5 }
  0x37   : > { %986 = vmatprep.subr.mxu1 %v1403_v1 }
  0x38   : > { %366 = vadd.xlane.f32.xlu0 %v365_v59  ;;  %987 = vmatpush1.msra.mxu1 %v1480_v4 }
  0x39   : > { %1247 = vmatmul.mubr.msk.f32.gmra.mxu0 %vm319_vm0, %v1552_v29  ;;  %988 = vmatprep.subr.mxu1 %v1403_v1 }
  0x3a   : > { %1249 = vmatprep.mubr.msk.f32.mxu0 %vm1404_vm1, %v1403_v1  ;;  %989 = vmatpush1.msra.mxu1 %v1477_v3 }
  0x3b   : > { %1016 = vmatprep.subr.mxu1 %v1403_v1 }
  0x3c   : > { %1017 = vmatpush2.msra.mxu1 %v295_v51 }
  0x3d   : > { %1250 = vmatmul.mubr.msk.f32.gmra.mxu0 %vm319_vm0, %v1571_v35  ;;  %1018 = vmatprep.subr.mxu1 %v1403_v1 }
  0x3e   : > { %1252 = vmatprep.mubr.msk.f32.mxu0 %vm1404_vm1, %v1403_v1  ;;  %1019 = vmatpush2.msra.mxu1 %v1606_v46 }
  0x3f   : > { %1020 = vmatprep.subr.mxu1 %v1403_v1 }
  0x40   : > { %1021 = vmatpush2.msra.mxu1 %v1590_v41 }
  0x41   : > { %1253 = vmatmul.mubr.msk.f32.gmra.mxu0 %vm319_vm0, %v1574_v36 }
  0x42   : > { %1255 = vmatprep.mubr.msk.f32.mxu0 %vm1404_vm1, %v1403_v1 }
  0x45   : > { %1256 = vmatmul.mubr.msk.f32.gmra.mxu0 %vm319_vm0, %v1555_v30 }
  0x46   : > { %1258 = vmatprep.mubr.msk.f32.mxu0 %vm1404_vm1, %v1403_v1 }
  0x49   : > { %1259 = vmatmul.mubr.msk.f32.gmra.mxu0 %vm319_vm0, %v1542_v27 }
  0x4a   : > { %1261 = vmatprep.mubr.msk.f32.mxu0 %vm1404_vm1, %v1403_v1 }
  0x4d   : > { %1262 = vmatmul.mubr.msk.f32.gmra.mxu0 %vm319_vm0, %v1530_v22 }
  0x4e   : > { %1264 = vmatprep.mubr.msk.f32.mxu0 %vm1404_vm1, %v1403_v1 }
  0x51   : > { %1265 = vmatmul.mubr.msk.f32.gmra.mxu0 %vm319_vm0, %v1509_v15 }
  0x52   : > { %1267 = vmatprep.mubr.msk.f32.mxu0 %vm1404_vm1, %v1403_v1 }
  0x55   : > { %1268 = vmatmul.mubr.msk.f32.gmra.mxu0 %vm319_vm0, %v1590_v41 }
  0x56   : > { %1270 = vmatprep.mubr.msk.f32.mxu0 %vm1404_vm1, %v1403_v1 }
  0x59   : > { %1271 = vmatmul.mubr.msk.f32.gmra.mxu0 %vm319_vm0, %v1606_v46 }
  0x5a   : > { %1273 = vmatprep.mubr.msk.f32.mxu0 %vm1404_vm1, %v1403_v1  ;;  %v886_v1 = vld [vmem:[%s266_s15 + $0x8] sm:$0xff] }
  0x5d   : > { %1274 = vmatmul.mubr.msk.f32.gmra.mxu0 %vm319_vm0, %v295_v51 }
  0x9d   : > { %v322_v60 = vpop.xlane.xlu0 %321  ;;  %v328_v9 = vpop.xlane.xlu1 %327 }
  0xa1   : > { %v325_v4 = vpop.xlane.xlu0 %324  ;;  %v331_v21 = vpop.xlane.xlu1 %330 }
  0xa5   : > { %v334_v30 = vpop.xlane.xlu0 %333  ;;  %v337_v39 = vpop.xlane.xlu1 %336 }
  0xa9   : > { %v340_v48 = vpop.xlane.xlu0 %339  ;;  %v343_v59 = vpop.xlane.xlu1 %342 }
  0xd5   : > { %v506_v61 = vpop.f32.mrf.mxu0 }
  0xd6   : > { %v600_v62 = vmul.f32 2.0, %v506_v61 }
  0xd7   : > { %v1221_v63 = vpop.f32.mrf.mxu0 }
  0xd8   : > { %v619_v2 = vsub.f32 %v322_v60, %v600_v62 }
  0xd9   : > { %v511_v3 = vpop.f32.mrf.mxu0 }
  0xda   : > { %v644_v5 = vadd.f32 %v1698_v0, %v619_v2  ;;  %v601_v6 = vmul.f32 2.0, %v511_v3 }
  0xdb   : > { %v1224_v8 = vpop.f32.mrf.mxu0 }
  0xdc   : > { %v663_v10 = vmax.f32 %v644_v5, 0.0  ;;  %v620_v11 = vsub.f32 %v325_v4, %v601_v6 }
  0xdd   : > { %v516_v12 = vpop.f32.mrf.mxu0 }
  0xde   : > { %v688_v13 = vmul.f32 %v1704_v7, %v663_v10  ;;  %v645_v14 = vadd.f32 %v1698_v0, %v620_v11  ;;  %v602_v15 = vmul.f32 2.0, %v516_v12 }
  0xdf   : > { %v1227_v16 = vpop.f32.mrf.mxu0 }
  0xe0   : > { %v707_v17 = vmul.f32 1.442695, %v688_v13  ;;  %v664_v18 = vmax.f32 %v645_v14, 0.0  ;;  %v621_v19 = vsub.f32 %v328_v9, %v602_v15  ;;  %v346_v9 = vpop.xlane.xlu0 %345 }
  0xe1   : > { %v521_v20 = vpop.f32.mrf.mxu0 }
  0xe2   : > { %1303 = vpow2.f32 %v707_v17  ;;  %v689_v22 = vmul.f32 %v1704_v7, %v664_v18  ;;  %v646_v23 = vadd.f32 %v1698_v0, %v621_v19  ;;  %v603_v24 = vmul.f32 2.0, %v521_v20  ;;  %v349_v20 = vpop.xlane.xlu1 %348 }
  0xe3   : > { %v1230_v25 = vpop.f32.mrf.mxu0 }
  0xe4   : > { %v709_v26 = vmul.f32 1.442695, %v689_v22  ;;  %v665_v27 = vmax.f32 %v646_v23, 0.0  ;;  %v622_v28 = vsub.f32 %v331_v21, %v603_v24 }
  0xe5   : > { %v526_v29 = vpop.f32.mrf.mxu0 }
  0xe6   : > { %1305 = vpow2.f32 %v709_v26  ;;  %v690_v31 = vmul.f32 %v1704_v7, %v665_v27  ;;  %v647_v32 = vadd.f32 %v1698_v0, %v622_v28  ;;  %v604_v33 = vmul.f32 2.0, %v526_v29  ;;  %v352_v26 = vpop.xlane.xlu0 %351 }
  0xe7   : > { %v1233_v34 = vpop.f32.mrf.mxu0 }
  0xe8   : > { %v711_v35 = vmul.f32 1.442695, %v690_v31  ;;  %v666_v36 = vmax.f32 %v647_v32, 0.0  ;;  %v623_v37 = vsub.f32 %v334_v30, %v604_v33 }
  0xe9   : > { %v531_v38 = vpop.f32.mrf.mxu0 }
  0xea   : > { %1307 = vpow2.f32 %v711_v35  ;;  %v691_v40 = vmul.f32 %v1704_v7, %v666_v36  ;;  %v648_v41 = vadd.f32 %v1698_v0, %v623_v37  ;;  %v605_v42 = vmul.f32 2.0, %v531_v38  ;;  %v358_v37 = vpop.xlane.xlu0 %357 }
  0xeb   : > { %v1236_v43 = vpop.f32.mrf.mxu0 }
  0xec   : > { %v713_v44 = vmul.f32 1.442695, %v691_v40  ;;  %v667_v45 = vmax.f32 %v648_v41, 0.0  ;;  %v624_v46 = vsub.f32 %v337_v39, %v605_v42  ;;  %v355_v43 = vpop.xlane.xlu1 %354 }
  0xed   : > { %v536_v47 = vpop.f32.mrf.mxu0 }
  0xee   : > { %1309 = vpow2.f32 %v713_v44  ;;  %v692_v49 = vmul.f32 %v1704_v7, %v667_v45  ;;  %v649_v50 = vadd.f32 %v1698_v0, %v624_v46  ;;  %v606_v51 = vmul.f32 2.0, %v536_v47 }
  0xef   : > { %v1716_v52 = vpop.eup %1303  ;;  %v1239_v53 = vpop.f32.mrf.mxu0 }
  0xf0   : > { %v715_v54 = vmul.f32 1.442695, %v692_v49  ;;  %v668_v55 = vmax.f32 %v649_v50, 0.0  ;;  %v625_v56 = vsub.f32 %v340_v48, %v606_v51  ;;  %v746_v57 = vsel %vm745_vm2, %v1716_v52, 0.0 }
  0xf1   : > { %v541_v58 = vpop.f32.mrf.mxu0  ;;  %747 = vadd.xlane.f32.xlu1 %v746_v57 }
  0xf2   : > { %1311 = vpow2.f32 %v715_v54  ;;  %v693_v60 = vmul.f32 %v1704_v7, %v668_v55  ;;  %v650_v61 = vadd.f32 %v1698_v0, %v625_v56  ;;  %v607_v62 = vmul.f32 2.0, %v541_v58  ;;  %v361_v55 = vpop.xlane.xlu0 %360 }
  0xf3   : > { %v1722_v63 = vpop.eup %1305  ;;  %v1242_v2 = vpop.f32.mrf.mxu0 }
  0xf4   : > { %v717_v3 = vmul.f32 1.442695, %v693_v60  ;;  %v669_v4 = vmax.f32 %v650_v61, 0.0  ;;  %v626_v5 = vsub.f32 %v343_v59, %v607_v62  ;;  %v749_v6 = vsel %vm745_vm2, %v1722_v63, 0.0 }
  0xf5   : > { %v546_v8 = vpop.f32.mrf.mxu0  ;;  %750 = vadd.xlane.f32.xlu0 %v749_v6 }
  0xf6   : > { %1313 = vpow2.f32 %v717_v3  ;;  %v694_v10 = vmul.f32 %v1704_v7, %v669_v4  ;;  %v651_v11 = vadd.f32 %v1698_v0, %v626_v5  ;;  %v608_v12 = vmul.f32 2.0, %v546_v8 }
  0xf7   : > { %v1728_v13 = vpop.eup %1307  ;;  %v1245_v14 = vpop.f32.mrf.mxu0 }
  0xf8   : > { %v719_v15 = vmul.f32 1.442695, %v694_v10  ;;  %v670_v16 = vmax.f32 %v651_v11, 0.0  ;;  %v627_v17 = vsub.f32 %v346_v9, %v608_v12  ;;  %v752_v18 = vsel %vm745_vm2, %v1728_v13, 0.0  ;;  %v364_v11 = vpop.xlane.xlu0 %363 }
  0xf9   : > { %v551_v19 = vpop.f32.mrf.mxu0  ;;  %753 = vadd.xlane.f32.xlu1 %v752_v18 }
  0xfa   : > { %1315 = vpow2.f32 %v719_v15  ;;  %v695_v21 = vmul.f32 %v1704_v7, %v670_v16  ;;  %v652_v22 = vadd.f32 %v1698_v0, %v627_v17  ;;  %v609_v23 = vmul.f32 2.0, %v551_v19 }
  0xfb   : > { %v1734_v24 = vpop.eup %1309  ;;  %v1248_v25 = vpop.f32.mrf.mxu0 }
  0xfc   : > { %v721_v27 = vmul.f32 1.442695, %v695_v21  ;;  %v671_v28 = vmax.f32 %v652_v22, 0.0  ;;  %v628_v29 = vsub.f32 %v349_v20, %v609_v23  ;;  %v755_v30 = vsel %vm745_vm2, %v1734_v24, 0.0 }
  0xfd   : > { %v556_v31 = vpop.f32.mrf.mxu0  ;;  %756 = vadd.xlane.f32.xlu0 %v755_v30  ;;  %v367_v30 = vpop.xlane.xlu0 %366 }
  0xfe   : > { %1317 = vpow2.f32 %v721_v27  ;;  %v696_v32 = vmul.f32 %v1704_v7, %v671_v28  ;;  %v653_v33 = vadd.f32 %v1698_v0, %v628_v29  ;;  %v610_v34 = vmul.f32 2.0, %v556_v31  ;;  %v370_v28 = vpop.xlane.xlu1 %369 }
  0xff   : > { %v1740_v35 = vpop.eup %1311  ;;  %v1251_v36 = vpop.f32.mrf.mxu0 }
 0x100   : > { %v723_v38 = vmul.f32 1.442695, %v696_v32  ;;  %v672_v39 = vmax.f32 %v653_v33, 0.0  ;;  %v629_v40 = vsub.f32 %v352_v26, %v610_v34  ;;  %v758_v41 = vsel %vm745_vm2, %v1740_v35, 0.0 }
 0x101   : > { %v561_v42 = vpop.f32.mrf.mxu0  ;;  %759 = vadd.xlane.f32.xlu1 %v758_v41 }
 0x102   : > { %1319 = vpow2.f32 %v723_v38  ;;  %v697_v44 = vmul.f32 %v1704_v7, %v672_v39  ;;  %v654_v45 = vadd.f32 %v1698_v0, %v629_v40  ;;  %v611_v46 = vmul.f32 2.0, %v561_v42 }
 0x103   : > { %v1746_v47 = vpop.eup %1313  ;;  %v1254_v48 = vpop.f32.mrf.mxu0 }
 0x104   : > { %v725_v49 = vmul.f32 1.442695, %v697_v44  ;;  %v673_v50 = vmax.f32 %v654_v45, 0.0  ;;  %v630_v51 = vsub.f32 %v355_v43, %v611_v46  ;;  %v761_v53 = vsel %vm745_vm2, %v1746_v47, 0.0  ;;  %v373_v48 = vpop.xlane.xlu1 %372 }
 0x105   : > { %v566_v54 = vpop.f32.mrf.mxu0  ;;  %762 = vadd.xlane.f32.xlu0 %v761_v53 }
 0x106   : > { %1321 = vpow2.f32 %v725_v49  ;;  %v698_v56 = vmul.f32 %v1704_v7, %v673_v50  ;;  %v655_v57 = vadd.f32 %v1698_v0, %v630_v51  ;;  %v612_v58 = vmul.f32 2.0, %v566_v54 }
 0x107   : > { %v1752_v59 = vpop.eup %1315  ;;  %v1257_v60 = vpop.f32.mrf.mxu0 }
 0x108   : > { %v727_v61 = vmul.f32 1.442695, %v698_v56  ;;  %v674_v62 = vmax.f32 %v655_v57, 0.0  ;;  %v631_v2 = vsub.f32 %v358_v37, %v612_v58  ;;  %v764_v3 = vsel %vm745_vm2, %v1752_v59, 0.0 }
 0x109   : > { %v571_v4 = vpop.f32.mrf.mxu0  ;;  %765 = vadd.xlane.f32.xlu1 %v764_v3 }
 0x10a   : > { %1323 = vpow2.f32 %v727_v61  ;;  %v699_v5 = vmul.f32 %v1704_v7, %v674_v62  ;;  %v656_v6 = vadd.f32 %v1698_v0, %v631_v2  ;;  %v613_v8 = vmul.f32 2.0, %v571_v4 }
 0x10b   : > { %v1758_v9 = vpop.eup %1317  ;;  %v1260_v10 = vpop.f32.mrf.mxu0 }
 0x10c   : > { %v729_v12 = vmul.f32 1.442695, %v699_v5  ;;  %v675_v14 = vmax.f32 %v656_v6, 0.0  ;;  %v632_v15 = vsub.f32 %v361_v55, %v613_v8  ;;  %v767_v16 = vsel %vm745_vm2, %v1758_v9, 0.0  ;;  %v376_v5 = vpop.xlane.xlu1 %375 }
 0x10d   : > { %v576_v17 = vpop.f32.mrf.mxu0  ;;  %768 = vadd.xlane.f32.xlu0 %v767_v16 }
 0x10e   : > { %1325 = vpow2.f32 %v729_v12  ;;  %v700_v18 = vmul.f32 %v1704_v7, %v675_v14  ;;  %v657_v19 = vadd.f32 %v1698_v0, %v632_v15  ;;  %v614_v20 = vmul.f32 2.0, %v576_v17 }
 0x10f   : > { %v1764_v21 = vpop.eup %1319  ;;  %v1263_v22 = vpop.f32.mrf.mxu0 }
 0x110   : > { %v731_v23 = vmul.f32 1.442695, %v700_v18  ;;  %v676_v25 = vmax.f32 %v657_v19, 0.0  ;;  %v633_v26 = vsub.f32 %v364_v11, %v614_v20  ;;  %v770_v27 = vsel %vm745_vm2, %v1764_v21, 0.0 }
 0x111   : > { %v581_v29 = vpop.f32.mrf.mxu0  ;;  %771 = vadd.xlane.f32.xlu1 %v770_v27 }
 0x112   : > { %1327 = vpow2.f32 %v731_v23  ;;  %v701_v31 = vmul.f32 %v1704_v7, %v676_v25  ;;  %v658_v32 = vadd.f32 %v1698_v0, %v633_v26  ;;  %v615_v33 = vmul.f32 2.0, %v581_v29 }
 0x113   : > { %v1770_v34 = vpop.eup %1321  ;;  %v1266_v36 = vpop.f32.mrf.mxu0 }
 0x114   : > { %v733_v37 = vmul.f32 1.442695, %v701_v31  ;;  %v677_v38 = vmax.f32 %v658_v32, 0.0  ;;  %v634_v39 = vsub.f32 %v367_v30, %v615_v33  ;;  %v773_v40 = vsel %vm745_vm2, %v1770_v34, 0.0 }
 0x115   : > { %v586_v41 = vpop.f32.mrf.mxu0  ;;  %774 = vadd.xlane.f32.xlu0 %v773_v40 }
 0x116   : > { %1329 = vpow2.f32 %v733_v37  ;;  %v702_v42 = vmul.f32 %v1704_v7, %v677_v38  ;;  %v659_v43 = vadd.f32 %v1698_v0, %v634_v39  ;;  %v616_v44 = vmul.f32 2.0, %v586_v41 }
 0x117   : > { %v1776_v45 = vpop.eup %1323  ;;  %v1269_v46 = vpop.f32.mrf.mxu0 }
 0x118   : > { %v735_v49 = vmul.f32 1.442695, %v702_v42  ;;  %v678_v50 = vmax.f32 %v659_v43, 0.0  ;;  %v635_v51 = vsub.f32 %v370_v28, %v616_v44  ;;  %v776_v53 = vsel %vm745_vm2, %v1776_v45, 0.0 }
 0x119   : > { %v591_v54 = vpop.f32.mrf.mxu0  ;;  %777 = vadd.xlane.f32.xlu1 %v776_v53 }
 0x11a   : > { %1331 = vpow2.f32 %v735_v49  ;;  %v703_v55 = vmul.f32 %v1704_v7, %v678_v50  ;;  %v660_v56 = vadd.f32 %v1698_v0, %v635_v51  ;;  %v617_v57 = vmul.f32 2.0, %v591_v54 }
 0x11b   : > { %v1782_v58 = vpop.eup %1325  ;;  %v1272_v60 = vpop.f32.mrf.mxu0 }
 0x11c   : > { %v737_v61 = vmul.f32 1.442695, %v703_v55  ;;  %v679_v62 = vmax.f32 %v660_v56, 0.0  ;;  %v636_v2 = vsub.f32 %v373_v48, %v617_v57  ;;  %v779_v3 = vsel %vm745_vm2, %v1782_v58, 0.0 }
 0x11d   : > { %v596_v4 = vpop.f32.mrf.mxu0  ;;  %780 = vadd.xlane.f32.xlu0 %v779_v3 }
 0x11e   : > { %1333 = vpow2.f32 %v737_v61  ;;  %v704_v6 = vmul.f32 %v1704_v7, %v679_v62  ;;  %v661_v8 = vadd.f32 %v1698_v0, %v636_v2  ;;  %v618_v10 = vmul.f32 2.0, %v596_v4 }
 0x11f   : > { %v1788_v11 = vpop.eup %1327  ;;  %v1275_v12 = vpop.f32.mrf.mxu0 }
 0x120   : > { %v739_v14 = vmul.f32 1.442695, %v704_v6  ;;  %v680_v15 = vmax.f32 %v661_v8, 0.0  ;;  %v637_v16 = vsub.f32 %v376_v5, %v618_v10  ;;  %v782_v17 = vsel %vm745_vm2, %v1788_v11, 0.0 }
 0x121   : > { %783 = vadd.xlane.f32.xlu1 %v782_v17 }
 0x122   : > { %1335 = vpow2.f32 %v739_v14  ;;  %v705_v18 = vmul.f32 %v1704_v7, %v680_v15  ;;  %v662_v19 = vadd.f32 %v1698_v0, %v637_v16 }
 0x123   : > { %v1794_v20 = vpop.eup %1329 }
 0x124   : > { %v741_v22 = vmul.f32 1.442695, %v705_v18  ;;  %v681_v23 = vmax.f32 %v662_v19, 0.0  ;;  %v785_v25 = vsel %vm745_vm2, %v1794_v20, 0.0 }
 0x125   : > { %786 = vadd.xlane.f32.xlu1 %v785_v25 }
 0x126   : > { %1337 = vpow2.f32 %v741_v22  ;;  %v706_v26 = vmul.f32 %v1704_v7, %v681_v23 }
 0x127   : > { %v1799_v27 = vpop.eup %1331 }
 0x128   : > { %v743_v28 = vmul.f32 1.442695, %v706_v26  ;;  %v788_v29 = vsel %vm745_vm2, %v1799_v27, 0.0 }
 0x129   : > { %789 = vadd.xlane.f32.xlu1 %v788_v29 }
 0x12a   : > { %1339 = vpow2.f32 %v743_v28 }
 0x12b   : > { %v1803_v0 = vpop.eup %1333 }
 0x12c   : > { %v791_v30 = vsel %vm745_vm2, %v1803_v0, 0.0 }
 0x12d   : > { %792 = vadd.xlane.f32.xlu1 %v791_v30 }
 0x12f   : > { %v1807_v31 = vpop.eup %1335 }
 0x130   : > { %v794_v32 = vsel %vm745_vm2, %v1807_v31, 0.0 }
 0x131   : > { %795 = vadd.xlane.f32.xlu0 %v794_v32 }
 0x133   : > { %v1811_v7 = vpop.eup %1337 }
 0x134   : > { %v797_v33 = vsel %vm745_vm2, %v1811_v7, 0.0 }
 0x135   : > { %798 = vadd.xlane.f32.xlu0 %v797_v33 }
 0x137   : > { %v1815_v36 = vpop.eup %1339 }
 0x138   : > { %v800_v37 = vsel %vm745_vm2, %v1815_v36, 0.0 }
 0x139   : > { %801 = vadd.xlane.f32.xlu0 %v800_v37 }
 0x17a   : > { %v748_v38 = vpop.xlane.xlu1 %747 }
 0x17b   : > { %v803_v39 = vadd.f32 1e-08, %v748_v38 }
 0x17d   : > { %1341 = vrcp.f32 %v803_v39 }
 0x17e   : > { %v751_v40 = vpop.xlane.xlu0 %750 }
 0x17f   : > { %v804_v41 = vadd.f32 1e-08, %v751_v40 }
 0x181   : > { %1343 = vrcp.f32 %v804_v41 }
 0x182   : > { %v754_v42 = vpop.xlane.xlu1 %753 }
 0x183   : > { %v805_v43 = vadd.f32 1e-08, %v754_v42 }
 0x185   : > { %1345 = vrcp.f32 %v805_v43 }
 0x186   : > { %v757_v44 = vpop.xlane.xlu0 %756 }
 0x187   : > { %v806_v46 = vadd.f32 1e-08, %v757_v44 }
 0x189   : > { %1347 = vrcp.f32 %v806_v46 }
 0x18a   : > { %v1342_v48 = vpop.eup %1341  ;;  %v760_v49 = vpop.xlane.xlu1 %759 }
 0x18b   : > { %v807_v50 = vadd.f32 1e-08, %v760_v49  ;;  %v823_v51 = vmul.f32 %v1342_v48, %v1716_v52 }
 0x18d   : > { %1349 = vrcp.f32 %v807_v50  ;;  %860 = vst.msk [vmem:[%s1824_s11] sm:$0xff] %vm745_vm2, %v823_v51  ;;  %887 = vxpose.xlu1.b32.start [1/16] (narrow) %v823_v51, 16 }
 0x18e   : > { %v1344_v53 = vpop.eup %1343  ;;  %v763_v54 = vpop.xlane.xlu0 %762 }
 0x18f   : > { %v808_v55 = vadd.f32 1e-08, %v763_v54  ;;  %v825_v56 = vmul.f32 %v1344_v53, %v1722_v63 }
 0x191   : > { %1351 = vrcp.f32 %v808_v55  ;;  %888 = vxpose.xlu1.b32.cont [2/16] (narrow) %v825_v56, 16  ;;  %861 = vst.msk [vmem:[%s1824_s11 + $0x8] sm:$0xff] %vm745_vm2, %v825_v56 }
 0x192   : > { %v1346_v57 = vpop.eup %1345  ;;  %v766_v60 = vpop.xlane.xlu1 %765 }
 0x193   : > { %v809_v61 = vadd.f32 1e-08, %v766_v60  ;;  %v827_v52 = vmul.f32 %v1346_v57, %v1728_v13 }
 0x195   : > { %1353 = vrcp.f32 %v809_v61  ;;  %862 = vst.msk [vmem:[%s1824_s11 + $0x10] sm:$0xff] %vm745_vm2, %v827_v52  ;;  %889 = vxpose.xlu1.b32.cont [3/16] (narrow) %v827_v52, 16  ;;  %v885_v61 = vld [vmem:[%s266_s15] sm:$0xff] }
 0x196   : > { %v1348_v62 = vpop.eup %1347  ;;  %v769_v2 = vpop.xlane.xlu0 %768 }
 0x197   : > { %v810_v3 = vadd.f32 1e-08, %v769_v2  ;;  %v829_v63 = vmul.f32 %v1348_v62, %v1734_v24 }
 0x199   : > { %1355 = vrcp.f32 %v810_v3  ;;  %890 = vxpose.xlu1.b32.cont [4/16] (narrow) %v829_v63, 16  ;;  %863 = vst.msk [vmem:[%s1824_s11 + $0x18] sm:$0xff] %vm745_vm2, %v829_v63 }
 0x19a   : > { %v1350_v4 = vpop.eup %1349  ;;  %v772_v5 = vpop.xlane.xlu1 %771 }
 0x19b   : > { %v811_v6 = vadd.f32 1e-08, %v772_v5  ;;  %v831_v13 = vmul.f32 %v1350_v4, %v1740_v35 }
 0x19d   : > { %1357 = vrcp.f32 %v811_v6  ;;  %864 = vst.msk [vmem:[%s1824_s11 + $0x20] sm:$0xff] %vm745_vm2, %v831_v13  ;;  %891 = vxpose.xlu1.b32.cont [5/16] (narrow) %v831_v13, 16 }
 0x19e   : > { %v1352_v8 = vpop.eup %1351  ;;  %v775_v10 = vpop.xlane.xlu0 %774 }
 0x19f   : > { %v812_v12 = vadd.f32 1e-08, %v775_v10  ;;  %v833_v24 = vmul.f32 %v1352_v8, %v1746_v47 }
 0x1a1   : > { %1359 = vrcp.f32 %v812_v12  ;;  %892 = vxpose.xlu1.b32.cont [6/16] (narrow) %v833_v24, 16  ;;  %865 = vst.msk [vmem:[%s1824_s11 + $0x28] sm:$0xff] %vm745_vm2, %v833_v24 }
 0x1a2   : > { %v1354_v14 = vpop.eup %1353  ;;  %v778_v15 = vpop.xlane.xlu1 %777 }
 0x1a3   : > { %v813_v16 = vadd.f32 1e-08, %v778_v15  ;;  %v835_v35 = vmul.f32 %v1354_v14, %v1752_v59 }
 0x1a5   : > { %1361 = vrcp.f32 %v813_v16  ;;  %866 = vst.msk [vmem:[%s1824_s11 + $0x30] sm:$0xff] %vm745_vm2, %v835_v35  ;;  %893 = vxpose.xlu1.b32.cont [7/16] (narrow) %v835_v35, 16 }
 0x1a6   : > { %v1356_v17 = vpop.eup %1355  ;;  %v781_v18 = vpop.xlane.xlu0 %780 }
 0x1a7   : > { %v814_v19 = vadd.f32 1e-08, %v781_v18  ;;  %v837_v47 = vmul.f32 %v1356_v17, %v1758_v9 }
 0x1a9   : > { %1363 = vrcp.f32 %v814_v19  ;;  %894 = vxpose.xlu1.b32.cont [8/16] (narrow) %v837_v47, 16  ;;  %867 = vst.msk [vmem:[%s1824_s11 + $0x38] sm:$0xff] %vm745_vm2, %v837_v47 }
 0x1aa   : > { %v1358_v22 = vpop.eup %1357  ;;  %v784_v23 = vpop.xlane.xlu1 %783 }
 0x1ab   : > { %v815_v25 = vadd.f32 1e-08, %v784_v23  ;;  %v839_v59 = vmul.f32 %v1358_v22, %v1764_v21 }
 0x1ad   : > { %1365 = vrcp.f32 %v815_v25  ;;  %868 = vst.msk [vmem:[%s1824_s11 + $0x40] sm:$0xff] %vm745_vm2, %v839_v59  ;;  %895 = vxpose.xlu1.b32.cont [9/16] (narrow) %v839_v59, 16 }
 0x1ae   : > { %v1360_v26 = vpop.eup %1359  ;;  %v787_v28 = vpop.xlane.xlu1 %786 }
 0x1af   : > { %v816_v29 = vadd.f32 1e-08, %v787_v28  ;;  %v841_v9 = vmul.f32 %v1360_v26, %v1770_v34 }
 0x1b1   : > { %1367 = vrcp.f32 %v816_v29  ;;  %896 = vxpose.xlu1.b32.cont [10/16] (narrow) %v841_v9, 16  ;;  %869 = vst.msk [vmem:[%s1824_s11 + $0x48] sm:$0xff] %vm745_vm2, %v841_v9 }
 0x1b2   : > { %v1362_v30 = vpop.eup %1361  ;;  %v790_v32 = vpop.xlane.xlu1 %789 }
 0x1b3   : > { %v817_v33 = vadd.f32 1e-08, %v790_v32  ;;  %v843_v21 = vmul.f32 %v1362_v30, %v1776_v45 }
 0x1b5   : > { %1369 = vrcp.f32 %v817_v33  ;;  %870 = vst.msk [vmem:[%s1824_s11 + $0x50] sm:$0xff] %vm745_vm2, %v843_v21  ;;  %897 = vxpose.xlu1.b32.cont [11/16] (narrow) %v843_v21, 16 }
 0x1b6   : > { %v1364_v37 = vpop.eup %1363  ;;  %v793_v38 = vpop.xlane.xlu1 %792 }
 0x1b7   : > { %v818_v39 = vadd.f32 1e-08, %v793_v38  ;;  %v845_v34 = vmul.f32 %v1364_v37, %v1782_v58 }
 0x1b9   : > { %1371 = vrcp.f32 %v818_v39  ;;  %898 = vxpose.xlu1.b32.cont [12/16] (narrow) %v845_v34, 16  ;;  %871 = vst.msk [vmem:[%s1824_s11 + $0x58] sm:$0xff] %vm745_vm2, %v845_v34 }
 0x1ba   : > { %v1366_v40 = vpop.eup %1365  ;;  %v796_v41 = vpop.xlane.xlu0 %795 }
 0x1bb   : > { %v819_v42 = vadd.f32 1e-08, %v796_v41  ;;  %v847_v45 = vmul.f32 %v1366_v40, %v1788_v11 }
 0x1bd   : > { %1373 = vrcp.f32 %v819_v42  ;;  %872 = vst.msk [vmem:[%s1824_s11 + $0x60] sm:$0xff] %vm745_vm2, %v847_v45  ;;  %899 = vxpose.xlu1.b32.cont [13/16] (narrow) %v847_v45, 16 }
 0x1be   : > { %v1368_v43 = vpop.eup %1367  ;;  %v799_v44 = vpop.xlane.xlu0 %798 }
 0x1bf   : > { %v820_v46 = vadd.f32 1e-08, %v799_v44  ;;  %v849_v58 = vmul.f32 %v1368_v43, %v1794_v20 }
 0x1c1   : > { %1375 = vrcp.f32 %v820_v46  ;;  %873 = vst.msk [vmem:[%s1824_s11 + $0x68] sm:$0xff] %vm745_vm2, %v849_v58  ;;  %900 = vxpose.xlu1.b32.cont [14/16] (narrow) %v849_v58, 16 }
 0x1c2   : > { %v1370_v48 = vpop.eup %1369  ;;  %v802_v49 = vpop.xlane.xlu0 %801 }
 0x1c3   : > { %v821_v11 = vadd.f32 1e-08, %v802_v49  ;;  %v851_v50 = vmul.f32 %v1370_v48, %v1799_v27 }
 0x1c5   : > { %1377 = vrcp.f32 %v821_v11  ;;  %874 = vst.msk [vmem:[%s1824_s11 + $0x70] sm:$0xff] %vm745_vm2, %v851_v50  ;;  %901 = vxpose.xlu1.b32.cont [15/16] (narrow) %v851_v50, 16 }
 0x1c6   : > { %v1372_v51 = vpop.eup %1371 }
 0x1c7   : > { %v853_v53 = vmul.f32 %v1372_v51, %v1803_v0 }
 0x1c9   : > { %875 = vst.msk [vmem:[%s1824_s11 + $0x78] sm:$0xff] %vm745_vm2, %v853_v53  ;;  %902 = vxpose.xlu1.b32.end [16/16] (narrow) %v853_v53, 16 }
 0x1ca   : > { %v1374_v20 = vpop.eup %1373 }
 0x1cb   : > { %v855_v54 = vmul.f32 %v1374_v20, %v1807_v31 }
 0x1cd   : > { %919 = vxpose.xlu0.b32.start [1/3] (short) (narrow) %v855_v54, 16  ;;  %876 = vst.msk [vmem:[%s1824_s11 + $0x80] sm:$0xff] %vm745_vm2, %v855_v54 }
 0x1ce   : > { %v1376_v55 = vpop.eup %1375 }
 0x1cf   : > { %v857_v27 = vmul.f32 %v1376_v55, %v1811_v7 }
 0x1d1   : > { %920 = vxpose.xlu0.b32.cont [2/3] (short) (narrow) %v857_v27, 16  ;;  %877 = vst.msk [vmem:[%s1824_s11 + $0x88] sm:$0xff] %vm745_vm2, %v857_v27 }
 0x1d2   : > { %v1378_v0 = vpop.eup %1377 }
 0x1d3   : > { %v859_v31 = vmul.f32 %v1378_v0, %v1815_v36 }
 0x1d5   : > { %921 = vxpose.xlu0.b32.end [3/3] (short) (narrow) %v859_v31, 16  ;;  %878 = vst.msk [vmem:[%s1824_s11 + $0x90] sm:$0xff] %vm745_vm2, %v859_v31 }
 0x209   : > { %v903_v7 = vpop.trf.xlu1 }
 0x20d   : > { %v904_v57 = vpop.trf.xlu1 }
 0x249   : > { %v935_v56 = vpop.trf.xlu0 }
 0x24a   : > { %1189 = vmatprep.mubr.msk.f32.mxu1 %vm951_vm3, %v935_v56 }
 0x24b   : > { %1023 = vmatmul.mubr.f32.vlgmr.msra.gmra.mxu1 %v903_v7 }
 0x24d   : > { %v936_v60 = vpop.trf.xlu0 }
 0x24e   : > { %1190 = vmatprep.mubr.msk.f32.mxu1 %vm951_vm3, %v936_v60 }
 0x24f   : > { %1028 = vmatmul.mubr.f32.gmra.mxu1 %v904_v57 }
 0x30b   : > { %v1024_v52 = vpop.f32.mrf.mxu1 }
 0x30c   : > { %v1033_v62 = vadd.f32 %v1024_v52, %v885_v61 }
 0x30d   : > { %v1026_v2 = vpop.f32.mrf.mxu1 }
 0x30e   : > { %1035 = vst.msk [vmem:[%s266_s15] sm:$0xff] %vm319_vm0, %v1033_v62 }
 0x30f   : > { %v1029_v36 = vpop.f32.mrf.mxu1 }
 0x310   : > { %v1034_v3 = vadd.f32 %v1029_v36, %v886_v1 }
 0x311   : > { %v1031_v63 = vpop.f32.mrf.mxu1 }
 0x312   : > { %1036 = vst.msk [vmem:[%s266_s15 + $0x8] sm:$0xff] %vm319_vm0, %v1034_v3 }
 0x313 PF: > { %s16_s20 = sadd.s32 1, %s1401_s20   ;;  %s1908_s18 = smov %s1397_s19 }
 0x314   : > { %p13_p5 = scmp.ge.s32.totalorder %s16_s20, 4   ;;  %s1909_s19 = smov %s1911_s21 }
 0x316   :  { %15 = sbr.rel (!%p13_p5) target bundleno = 2 (0x2), region = 82 }

</bundles_post_ra>
